<compile_context>
chip_gen: v7x
topology: tpu7x:2x2x1
jax: 0.10.0
libtpu: 0.0.40
codegen_flags: <defaults>
</compile_context>

<pallas_src>
import functools

import jax
import jax.numpy as jnp
from jax import lax
from jax.experimental import pallas as pl
from jax.experimental.pallas import tpu as pltpu


def _ntxent_kernel(q1_ref, q2_ref, k1_ref, k2_ref,          # inputs
                   out1_ref, out2_ref,                       # outputs (per-row losses)
                   qn_ref, pos_ref, den_ref,                 # VMEM scratch
                   *, inv_temp):
    i = pl.program_id(0)                  # query-row tile
    j = pl.program_id(1)                  # key-row tile (reduction axis)
    nk = pl.num_programs(1)
    tq = q1_ref.shape[0]
    tk = k1_ref.shape[0]

    @pl.when(j == 0)
    def _init():
        # Normalize both query views once per query tile; cache them stacked
        # as a single (2*tq, dim) MXU operand, pre-scaled by 1/temperature.
        q1 = q1_ref[...].astype(jnp.float32)
        q2 = q2_ref[...].astype(jnp.float32)
        # x * rsqrt(max(|x|^2, eps^2))  ==  x / max(|x|, eps)  (PyTorch eps=1e-12).
        q1n = q1 * lax.rsqrt(
            jnp.maximum(jnp.sum(q1 * q1, axis=1, keepdims=True), 1e-24))
        q2n = q2 * lax.rsqrt(
            jnp.maximum(jnp.sum(q2 * q2, axis=1, keepdims=True), 1e-24))
        # Positives: sim[a, B+a] == sim[B+a, a]  (already divided by T).
        pos_ref[...] = jnp.sum(q1n * q2n, axis=1, keepdims=True) * inv_temp
        qn_ref[...] = jnp.concatenate([q1n, q2n], axis=0) * inv_temp
        den_ref[...] = jnp.zeros_like(den_ref)

    # Normalize the key rows of both views for this key tile (unit norm only;
    # the 1/T scale already lives in the query operand).
    k1 = k1_ref[...].astype(jnp.float32)
    k2 = k2_ref[...].astype(jnp.float32)
    k1n = k1 * lax.rsqrt(
        jnp.maximum(jnp.sum(k1 * k1, axis=1, keepdims=True), 1e-24))
    k2n = k2 * lax.rsqrt(
        jnp.maximum(jnp.sum(k2 * k2, axis=1, keepdims=True), 1e-24))

    qn = qn_ref[...]                                   # (2*tq, dim)
    dnum = (((1,), (1,)), ((), ()))                    # contract last dims (no .T copy)
    s1 = lax.dot_general(qn, k1n, dnum, preferred_element_type=jnp.float32)  # (2*tq, tk)
    s2 = lax.dot_general(qn, k2n, dnum, preferred_element_type=jnp.float32)  # (2*tq, tk)

    # Mask the global self-similarity diagonal BEFORE the exp.
    # Rows [0, tq)      are view-1 queries (global row  = i*tq + a):
    #   can only hit the diagonal against view-1 keys (s1).
    # Rows [tq, 2*tq)   are view-2 queries (global row  = B + i*tq + (a - tq)):
    #   can only hit the diagonal against view-2 keys (s2).
    row = lax.broadcasted_iota(jnp.int32, (2 * tq, tk), 0)
    col = lax.broadcasted_iota(jnp.int32, (2 * tq, tk), 1) + j * tk
    is_v1 = row < tq
    diag1 = is_v1 & ((i * tq + row) == col)
    diag2 = jnp.logical_not(is_v1) & ((i * tq + row - tq) == col)

    neg_inf = jnp.float32(-jnp.inf)
    e1 = jnp.exp(jnp.where(diag1, neg_inf, s1))
    e2 = jnp.exp(jnp.where(diag2, neg_inf, s2))

    # Online denominator accumulation over all 2B keys.
    den_ref[...] += (jnp.sum(e1, axis=1, keepdims=True)
                     + jnp.sum(e2, axis=1, keepdims=True))

    @pl.when(j == nk - 1)
    def _finalize():
        # -log( exp(pos/T) / denom ) = -pos/T + log(denom)
        logd = jnp.log(den_ref[...])          # (2*tq, 1)
        lp = pos_ref[...]                     # (tq, 1), already pos/T
        out1_ref[...] = logd[:tq] - lp        # view-1 query rows
        out2_ref[...] = logd[tq:] - lp        # view-2 query rows


def _pick_tile(n, max_tile):
    """Largest row-tile <= max_tile that divides n and satisfies the sublane rule."""
    if n <= max_tile:
        return n                               # full extent is always legal
    for t in range(max_tile, 7, -1):
        if n % t == 0 and t % 8 == 0:
            return t
    return n                                   # fallback: one big tile


@functools.partial(jax.jit, static_argnames=("temperature", "tq", "tk"))
def contrastive_loss(proj_1, proj_2, temperature=0.5, tq=None, tk=None):
    """NT-Xent / InfoNCE loss.  proj_1, proj_2: [batch, embedding_dim]."""
    assert proj_1.shape == proj_2.shape
    batch, dim = proj_1.shape

    tq = _pick_tile(batch, 128) if tq is None else tq
    tk = _pick_tile(batch, 256) if tk is None else tk
    assert batch % tq == 0 and batch % tk == 0, (batch, tq, tk)
    grid = (batch // tq, batch // tk)

    out1, out2 = pl.pallas_call(
        functools.partial(_ntxent_kernel, inv_temp=1.0 / float(temperature)),
        out_shape=(jax.ShapeDtypeStruct((batch, 1), jnp.float32),
                   jax.ShapeDtypeStruct((batch, 1), jnp.float32)),
        grid_spec=pltpu.PrefetchScalarGridSpec(
            num_scalar_prefetch=0,
            grid=grid,
            in_specs=[
                pl.BlockSpec((tq, dim), lambda i, j: (i, 0)),   # queries, view 1
                pl.BlockSpec((tq, dim), lambda i, j: (i, 0)),   # queries, view 2
                pl.BlockSpec((tk, dim), lambda i, j: (j, 0)),   # keys,    view 1
                pl.BlockSpec((tk, dim), lambda i, j: (j, 0)),   # keys,    view 2
            ],
            out_specs=[
                pl.BlockSpec((tq, 1), lambda i, j: (i, 0)),     # losses, view-1 rows
                pl.BlockSpec((tq, 1), lambda i, j: (i, 0)),     # losses, view-2 rows
            ],
            scratch_shapes=[
                pltpu.VMEM((2 * tq, dim), jnp.float32),   # normalized+scaled queries
                pltpu.VMEM((tq, 1), jnp.float32),         # positives / T
                pltpu.VMEM((2 * tq, 1), jnp.float32),     # running denominators
            ],
        ),
        compiler_params=pltpu.CompilerParams(
            dimension_semantics=("parallel", "arbitrary")),
    )(proj_1, proj_2, proj_1, proj_2)

    return (jnp.sum(out1) + jnp.sum(out2)) / (2.0 * batch)


def _reference_loss(proj_1, proj_2, temperature=0.5):
    """Plain-JAX reference mirroring the PyTorch module."""
    b = proj_1.shape[0]
    z = jnp.concatenate([proj_1, proj_2], axis=0).astype(jnp.float32)
    z = z / jnp.maximum(jnp.linalg.norm(z, axis=1, keepdims=True), 1e-12)
    sim = z @ z.T
    pos = jnp.concatenate(
        [jnp.diagonal(sim, offset=b), jnp.diagonal(sim, offset=-b)], axis=0)
    mask = 1.0 - jnp.eye(2 * b)
    denom = jnp.sum(mask * jnp.exp(sim / temperature), axis=1)
    losses = -jnp.log(jnp.exp(pos / temperature) / denom)
    return jnp.sum(losses) / (2 * b)


if __name__ == "__main__":
    key = jax.random.PRNGKey(0)
    k1, k2, k3, k4 = jax.random.split(key, 4)

    # Small case (single-tile grid), shapes consistent with the module.
    batch, dim = 8, 32
    p1 = jax.random.normal(k1, (batch, dim), dtype=jnp.float32)
    p2 = jax.random.normal(k2, (batch, dim), dtype=jnp.float32)
    loss = jax.block_until_ready(contrastive_loss(p1, p2, temperature=0.5))
    ref = _reference_loss(p1, p2, temperature=0.5)
    assert jnp.allclose(loss, ref, atol=1e-5, rtol=1e-5), (loss, ref)

    # Multi-tile case exercising the gridded / online-denominator path.
    batch, dim = 32, 128
    p1 = jax.random.normal(k3, (batch, dim), dtype=jnp.float32)
    p2 = jax.random.normal(k4, (batch, dim), dtype=jnp.float32)
    loss = jax.block_until_ready(
        contrastive_loss(p1, p2, temperature=0.5, tq=8, tk=8))
    ref = _reference_loss(p1, p2, temperature=0.5)
    assert jnp.allclose(loss, ref, atol=1e-5, rtol=1e-5), (loss, ref)

    print("KERNEL_OK")
</pallas_src>

<mosaic_0001>
module attributes {stable_mosaic.version = 11 : i64} {
  func.func @_ntxent_kernel(%arg0: i32, %arg1: i32, %arg2: memref<8x32xf32, #tpu.memory_space<vmem>>, %arg3: memref<8x32xf32, #tpu.memory_space<vmem>>, %arg4: memref<8x32xf32, #tpu.memory_space<vmem>>, %arg5: memref<8x32xf32, #tpu.memory_space<vmem>>, %arg6: memref<8x1xf32, #tpu.memory_space<vmem>>, %arg7: memref<8x1xf32, #tpu.memory_space<vmem>>, %arg8: memref<16x32xf32, #tpu.memory_space<vmem>>, %arg9: memref<8x1xf32, #tpu.memory_space<vmem>>, %arg10: memref<16x1xf32, #tpu.memory_space<vmem>>) attributes {dimension_semantics = [#tpu.dimension_semantics<parallel>, #tpu.dimension_semantics<arbitrary>], iteration_bounds = array<i64: 1, 1>, scalar_prefetch = 0 : i64, scratch_operands = 3 : i64, tpu.core_type = #tpu.core_type<tc>, window_params = [{transform_indices = @transform_0, window_bounds = array<i64: 8, 32>}, {transform_indices = @transform_1, window_bounds = array<i64: 8, 32>}, {transform_indices = @transform_2, window_bounds = array<i64: 8, 32>}, {transform_indices = @transform_3, window_bounds = array<i64: 8, 32>}, {transform_indices = @transform_4, window_bounds = array<i64: 8, 1>}, {transform_indices = @transform_5, window_bounds = array<i64: 8, 1>}]} {
    %c0_i32 = arith.constant 0 : i32
    %0 = arith.cmpi eq, %arg1, %c0_i32 : i32
    %1 = arith.extui %0 : i1 to i32
    %c0_i32_0 = arith.constant 0 : i32
    %2 = arith.cmpi ne, %1, %c0_i32_0 : i32
    scf.if %2 {
      %c0_26 = arith.constant 0 : index
      %c0_27 = arith.constant 0 : index
      %61 = vector.load %arg2[%c0_26, %c0_27] : memref<8x32xf32, #tpu.memory_space<vmem>>, vector<8x32xf32>
      %c0_28 = arith.constant 0 : index
      %c0_29 = arith.constant 0 : index
      %62 = vector.load %arg3[%c0_28, %c0_29] : memref<8x32xf32, #tpu.memory_space<vmem>>, vector<8x32xf32>
      %63 = arith.mulf %61, %61 : vector<8x32xf32>
      %cst_30 = arith.constant dense<0.000000e+00> : vector<8xf32>
      %64 = vector.multi_reduction <add>, %63, %cst_30 [1] : vector<8x32xf32> to vector<8xf32>
      %65 = vector.shape_cast %64 : vector<8xf32> to vector<8x1xf32>
      %cst_31 = arith.constant 1.000000e-24 : f32
      %66 = vector.broadcast %cst_31 : f32 to vector<8x1xf32>
      %67 = arith.maximumf %65, %66 : vector<8x1xf32>
      %68 = math.rsqrt %67 : vector<8x1xf32>
      %69 = vector.broadcast %68 : vector<8x1xf32> to vector<8x32xf32>
      %70 = arith.mulf %61, %69 : vector<8x32xf32>
      %71 = arith.mulf %62, %62 : vector<8x32xf32>
      %cst_32 = arith.constant dense<0.000000e+00> : vector<8xf32>
      %72 = vector.multi_reduction <add>, %71, %cst_32 [1] : vector<8x32xf32> to vector<8xf32>
      %73 = vector.shape_cast %72 : vector<8xf32> to vector<8x1xf32>
      %cst_33 = arith.constant 1.000000e-24 : f32
      %74 = vector.broadcast %cst_33 : f32 to vector<8x1xf32>
      %75 = arith.maximumf %73, %74 : vector<8x1xf32>
      %76 = math.rsqrt %75 : vector<8x1xf32>
      %77 = vector.broadcast %76 : vector<8x1xf32> to vector<8x32xf32>
      %78 = arith.mulf %62, %77 : vector<8x32xf32>
      %79 = arith.mulf %70, %78 : vector<8x32xf32>
      %cst_34 = arith.constant dense<0.000000e+00> : vector<8xf32>
      %80 = vector.multi_reduction <add>, %79, %cst_34 [1] : vector<8x32xf32> to vector<8xf32>
      %81 = vector.shape_cast %80 : vector<8xf32> to vector<8x1xf32>
      %cst_35 = arith.constant 2.000000e+00 : f32
      %82 = vector.broadcast %cst_35 : f32 to vector<8x1xf32>
      %83 = arith.mulf %81, %82 : vector<8x1xf32>
      %c0_36 = arith.constant 0 : index
      %c0_37 = arith.constant 0 : index
      %84 = vector.load %arg9[%c0_36, %c0_37] : memref<8x1xf32, #tpu.memory_space<vmem>>, vector<8x1xf32>
      tpu.vector_store %arg9[%c0_36, %c0_37], %83 {strides = array<i32>} : memref<8x1xf32, #tpu.memory_space<vmem>>, vector<8x1xf32>,
      %85 = tpu.concatenate %70, %78 in 0 : vector<8x32xf32>, vector<8x32xf32> -> vector<16x32xf32>
      %cst_38 = arith.constant 2.000000e+00 : f32
      %86 = vector.broadcast %cst_38 : f32 to vector<16x32xf32>
      %87 = arith.mulf %85, %86 : vector<16x32xf32>
      %c0_39 = arith.constant 0 : index
      %c0_40 = arith.constant 0 : index
      %88 = vector.load %arg8[%c0_39, %c0_40] : memref<16x32xf32, #tpu.memory_space<vmem>>, vector<16x32xf32>
      tpu.vector_store %arg8[%c0_39, %c0_40], %87 {strides = array<i32>} : memref<16x32xf32, #tpu.memory_space<vmem>>, vector<16x32xf32>,
      %cst_41 = arith.constant 0.000000e+00 : f32
      %89 = vector.broadcast %cst_41 : f32 to vector<16x1xf32>
      %c0_42 = arith.constant 0 : index
      %c0_43 = arith.constant 0 : index
      %90 = vector.load %arg10[%c0_42, %c0_43] : memref<16x1xf32, #tpu.memory_space<vmem>>, vector<16x1xf32>
      tpu.vector_store %arg10[%c0_42, %c0_43], %89 {strides = array<i32>} : memref<16x1xf32, #tpu.memory_space<vmem>>, vector<16x1xf32>,
    } else {
    }
    %c0 = arith.constant 0 : index
    %c0_1 = arith.constant 0 : index
    %3 = vector.load %arg4[%c0, %c0_1] : memref<8x32xf32, #tpu.memory_space<vmem>>, vector<8x32xf32>
    %c0_2 = arith.constant 0 : index
    %c0_3 = arith.constant 0 : index
    %4 = vector.load %arg5[%c0_2, %c0_3] : memref<8x32xf32, #tpu.memory_space<vmem>>, vector<8x32xf32>
    %5 = arith.mulf %3, %3 : vector<8x32xf32>
    %cst = arith.constant dense<0.000000e+00> : vector<8xf32>
    %6 = vector.multi_reduction <add>, %5, %cst [1] : vector<8x32xf32> to vector<8xf32>
    %7 = vector.shape_cast %6 : vector<8xf32> to vector<8x1xf32>
    %cst_4 = arith.constant 1.000000e-24 : f32
    %8 = vector.broadcast %cst_4 : f32 to vector<8x1xf32>
    %9 = arith.maximumf %7, %8 : vector<8x1xf32>
    %10 = math.rsqrt %9 : vector<8x1xf32>
    %11 = vector.broadcast %10 : vector<8x1xf32> to vector<8x32xf32>
    %12 = arith.mulf %3, %11 : vector<8x32xf32>
    %13 = arith.mulf %4, %4 : vector<8x32xf32>
    %cst_5 = arith.constant dense<0.000000e+00> : vector<8xf32>
    %14 = vector.multi_reduction <add>, %13, %cst_5 [1] : vector<8x32xf32> to vector<8xf32>
    %15 = vector.shape_cast %14 : vector<8xf32> to vector<8x1xf32>
    %cst_6 = arith.constant 1.000000e-24 : f32
    %16 = vector.broadcast %cst_6 : f32 to vector<8x1xf32>
    %17 = arith.maximumf %15, %16 : vector<8x1xf32>
    %18 = math.rsqrt %17 : vector<8x1xf32>
    %19 = vector.broadcast %18 : vector<8x1xf32> to vector<8x32xf32>
    %20 = arith.mulf %4, %19 : vector<8x32xf32>
    %c0_7 = arith.constant 0 : index
    %c0_8 = arith.constant 0 : index
    %21 = vector.load %arg8[%c0_7, %c0_8] : memref<16x32xf32, #tpu.memory_space<vmem>>, vector<16x32xf32>
    %cst_9 = arith.constant dense<0.000000e+00> : vector<16x8xf32>
    %22 = tpu.matmul %21, %12, %cst_9 {dimension_numbers = #tpu.dot_dimension_numbers<[1], [1], [0], [0], [0, 0, 1, 0], [], []>} : vector<16x32xf32>, vector<8x32xf32>, vector<16x8xf32> -> vector<16x8xf32>
    %cst_10 = arith.constant dense<0.000000e+00> : vector<16x8xf32>
    %23 = tpu.matmul %21, %20, %cst_10 {dimension_numbers = #tpu.dot_dimension_numbers<[1], [1], [0], [0], [0, 0, 1, 0], [], []>} : vector<16x32xf32>, vector<8x32xf32>, vector<16x8xf32> -> vector<16x8xf32>
    %24 = tpu.iota {dimensions = array<i32: 0>} : vector<16x8xi32>
    %25 = tpu.iota {dimensions = array<i32: 1>} : vector<16x8xi32>
    %c8_i32 = arith.constant 8 : i32
    %26 = arith.muli %arg1, %c8_i32 : i32
    %27 = vector.broadcast %26 : i32 to vector<16x8xi32>
    %28 = arith.addi %25, %27 : vector<16x8xi32>
    %c8_i32_11 = arith.constant 8 : i32
    %29 = vector.broadcast %c8_i32_11 : i32 to vector<16x8xi32>
    %30 = arith.cmpi slt, %24, %29 : vector<16x8xi32>
    %c8_i32_12 = arith.constant 8 : i32
    %31 = arith.muli %arg0, %c8_i32_12 : i32
    %32 = vector.broadcast %31 : i32 to vector<16x8xi32>
    %33 = arith.addi %32, %24 : vector<16x8xi32>
    %34 = arith.cmpi eq, %33, %28 : vector<16x8xi32>
    %35 = arith.andi %30, %34 : vector<16x8xi1>
    %cst_13 = arith.constant dense<true> : vector<16x8xi1>
    %36 = arith.xori %30, %cst_13 : vector<16x8xi1>
    %c8_i32_14 = arith.constant 8 : i32
    %37 = arith.muli %arg0, %c8_i32_14 : i32
    %38 = vector.broadcast %37 : i32 to vector<16x8xi32>
    %39 = arith.addi %38, %24 : vector<16x8xi32>
    %c8_i32_15 = arith.constant 8 : i32
    %40 = vector.broadcast %c8_i32_15 : i32 to vector<16x8xi32>
    %41 = arith.subi %39, %40 : vector<16x8xi32>
    %42 = arith.cmpi eq, %41, %28 : vector<16x8xi32>
    %43 = arith.andi %36, %42 : vector<16x8xi1>
    %cst_16 = arith.constant 0xFF800000 : f32
    %44 = vector.broadcast %cst_16 : f32 to vector<16x8xf32>
    %45 = arith.select %35, %44, %22 : vector<16x8xi1>, vector<16x8xf32>
    %46 = math.exp %45 : vector<16x8xf32>
    %cst_17 = arith.constant 0xFF800000 : f32
    %47 = vector.broadcast %cst_17 : f32 to vector<16x8xf32>
    %48 = arith.select %43, %47, %23 : vector<16x8xi1>, vector<16x8xf32>
    %49 = math.exp %48 : vector<16x8xf32>
    %c0_18 = arith.constant 0 : index
    %c0_19 = arith.constant 0 : index
    %50 = vector.load %arg10[%c0_18, %c0_19] : memref<16x1xf32, #tpu.memory_space<vmem>>, vector<16x1xf32>
    %cst_20 = arith.constant dense<0.000000e+00> : vector<16xf32>
    %51 = vector.multi_reduction <add>, %46, %cst_20 [1] : vector<16x8xf32> to vector<16xf32>
    %52 = vector.shape_cast %51 : vector<16xf32> to vector<16x1xf32>
    %cst_21 = arith.constant dense<0.000000e+00> : vector<16xf32>
    %53 = vector.multi_reduction <add>, %49, %cst_21 [1] : vector<16x8xf32> to vector<16xf32>
    %54 = vector.shape_cast %53 : vector<16xf32> to vector<16x1xf32>
    %55 = arith.addf %52, %54 : vector<16x1xf32>
    %56 = arith.addf %50, %55 : vector<16x1xf32>
    %c0_22 = arith.constant 0 : index
    %c0_23 = arith.constant 0 : index
    %57 = vector.load %arg10[%c0_22, %c0_23] : memref<16x1xf32, #tpu.memory_space<vmem>>, vector<16x1xf32>
    tpu.vector_store %arg10[%c0_22, %c0_23], %56 {strides = array<i32>} : memref<16x1xf32, #tpu.memory_space<vmem>>, vector<16x1xf32>,
    %c0_i32_24 = arith.constant 0 : i32
    %58 = arith.cmpi eq, %arg1, %c0_i32_24 : i32
    %59 = arith.extui %58 : i1 to i32
    %c0_i32_25 = arith.constant 0 : i32
    %60 = arith.cmpi ne, %59, %c0_i32_25 : i32
    scf.if %60 {
      %c0_26 = arith.constant 0 : index
      %c0_27 = arith.constant 0 : index
      %61 = vector.load %arg10[%c0_26, %c0_27] : memref<16x1xf32, #tpu.memory_space<vmem>>, vector<16x1xf32>
      %62 = math.log %61 : vector<16x1xf32>
      %c0_28 = arith.constant 0 : index
      %c0_29 = arith.constant 0 : index
      %63 = vector.load %arg9[%c0_28, %c0_29] : memref<8x1xf32, #tpu.memory_space<vmem>>, vector<8x1xf32>
      %64 = vector.extract_strided_slice %62 {offsets = [0, 0], sizes = [8, 1], strides = [1, 1]} : vector<16x1xf32> to vector<8x1xf32>
      %65 = arith.subf %64, %63 : vector<8x1xf32>
      %c0_30 = arith.constant 0 : index
      %c0_31 = arith.constant 0 : index
      %66 = vector.load %arg6[%c0_30, %c0_31] : memref<8x1xf32, #tpu.memory_space<vmem>>, vector<8x1xf32>
      tpu.vector_store %arg6[%c0_30, %c0_31], %65 {strides = array<i32>} : memref<8x1xf32, #tpu.memory_space<vmem>>, vector<8x1xf32>,
      %67 = vector.extract_strided_slice %62 {offsets = [8, 0], sizes = [8, 1], strides = [1, 1]} : vector<16x1xf32> to vector<8x1xf32>
      %68 = arith.subf %67, %63 : vector<8x1xf32>
      %c0_32 = arith.constant 0 : index
      %c0_33 = arith.constant 0 : index
      %69 = vector.load %arg7[%c0_32, %c0_33] : memref<8x1xf32, #tpu.memory_space<vmem>>, vector<8x1xf32>
      tpu.vector_store %arg7[%c0_32, %c0_33], %68 {strides = array<i32>} : memref<8x1xf32, #tpu.memory_space<vmem>>, vector<8x1xf32>,
    } else {
    }
    return
  }
  func.func @transform_0(%arg0: i32, %arg1: i32) -> (i32, i32) {
    %c0_i32 = arith.constant 0 : i32
    %c0_i32_0 = arith.constant 0 : i32
    return %arg0, %c0_i32 : i32, i32
  }
  func.func @transform_1(%arg0: i32, %arg1: i32) -> (i32, i32) {
    %c0_i32 = arith.constant 0 : i32
    %c0_i32_0 = arith.constant 0 : i32
    return %arg0, %c0_i32 : i32, i32
  }
  func.func @transform_2(%arg0: i32, %arg1: i32) -> (i32, i32) {
    %c0_i32 = arith.constant 0 : i32
    %c0_i32_0 = arith.constant 0 : i32
    return %arg1, %c0_i32 : i32, i32
  }
  func.func @transform_3(%arg0: i32, %arg1: i32) -> (i32, i32) {
    %c0_i32 = arith.constant 0 : i32
    %c0_i32_0 = arith.constant 0 : i32
    return %arg1, %c0_i32 : i32, i32
  }
  func.func @transform_4(%arg0: i32, %arg1: i32) -> (i32, i32) {
    %c0_i32 = arith.constant 0 : i32
    %c0_i32_0 = arith.constant 0 : i32
    return %arg0, %c0_i32 : i32, i32
  }
  func.func @transform_5(%arg0: i32, %arg1: i32) -> (i32, i32) {
    %c0_i32 = arith.constant 0 : i32
    %c0_i32_0 = arith.constant 0 : i32
    return %arg0, %c0_i32 : i32, i32
  }
}

</mosaic_0001>

<bundles_post_ra>
// kernel: contrastive_loss.1
= control target key start
LH: loop header
LB: loop body
LE: loop exit
PB: predicated region body
PF: predicated region fallthrough
CT: control target
= control target key end

     0   :  { %11 = vsyncpa [#allocation6], 0  ;;  %s620_s0 = inlined_call_operand.hbm [shape: f32[8,32], index: 0, kind: input, shape index: {}, may-alias: {0,2}]   ;;  %s621_s1 = inlined_call_operand.hbm [shape: f32[8,32], index: 1, kind: input, shape index: {}, may-alias: {1,3}]   ;;  %s622_s2 = inlined_call_operand.hbm [shape: f32[8,32], index: 2, kind: input, shape index: {}, may-alias: {0,2}]   ;;  %s623_s3 = inlined_call_operand.hbm [shape: f32[8,32], index: 3, kind: input, shape index: {}, may-alias: {1,3}]   ;;  %s624_s4 = inlined_call_operand.vmem [shape: f32[8,1], index: 4, kind: output, shape index: {0}]   ;;  %s625_s5 = inlined_call_operand.vmem [shape: f32[8,1], index: 5, kind: output, shape index: {1}]  }
   0x1   :  { %12 = vsyncpa [#allocation8], 0 }
   0x2   :  { %13 = vsyncpa [#allocation11], 0  ;;  %s509_s18 = smov [#allocation7]   ;;  %s510_s20 = smov [#allocation5]  }
   0x3   :  { %s30_s19 = sshll.u32 %s509_s18, 4  ;;  %s20_s21 = sshll.u32 %s510_s20, 4  ;;  %s31_s19 = int_to_ptr.vmem [resolvable:$true] %s30_s19  ;;  %s21_s21 = int_to_ptr.vmem [resolvable:$true] %s20_s21 }
   0x4   :  { %s415_s24 = scalar_lea.hbm %s621_s1, 128 }
   0x5   :  { %p416_p0 = scmp.ne.s32.totalorder %s621_s1, %s415_s24  ;;  %p419_p1 = scmp.lt.u32.totalorder %s415_s24, %s621_s1 }
   0x7   :  { %p421_p2 = pnand %p419_p1, %p416_p0 }
   0x9   :  { %424 = shalt.err (!%p421_p2)
}
   0xa   :  { %s425_s29 = scalar_lea.vmem %s31_s19, 128  ;;  %p430_p4 = scmp.lt.s32.totalorder %s31_s19, %s31_s19 }
   0xb   :  { %p426_p3 = scmp.ne.s32.totalorder %s31_s19, %s425_s29  ;;  %p431_p5 = scmp.lt.s32.totalorder %s425_s29, %s425_s29 }
   0xd   :  { %p432_p6 = por %p431_p5, %p430_p4 }
   0xf   :  { %p433_p7 = pnand %p432_p6, %p426_p3 }
  0x11   :  { %436 = shalt.err (!%p433_p7)
}
  0x12   :  { %33 = dma.hbm_to_vmem [thread:$0]  %s621_s1, 128, %s31_s19, [#allocation8]  }
  0x13   :  { %s437_s9 = scalar_lea.hbm %s620_s0, 128 }
  0x14   :  { %p438_p8 = scmp.ne.s32.totalorder %s620_s0, %s437_s9  ;;  %p441_p9 = scmp.lt.u32.totalorder %s437_s9, %s620_s0 }
  0x16   :  { %p443_p10 = pnand %p441_p9, %p438_p8 }
  0x18   :  { %446 = shalt.err (!%p443_p10)
}
  0x19   :  { %s447_s14 = scalar_lea.vmem %s21_s21, 128  ;;  %p452_p12 = scmp.lt.s32.totalorder %s21_s21, %s21_s21 }
  0x1a   :  { %p448_p11 = scmp.ne.s32.totalorder %s21_s21, %s447_s14  ;;  %p453_p13 = scmp.lt.s32.totalorder %s447_s14, %s447_s14 }
  0x1c   :  { %p454_p0 = por %p453_p13, %p452_p12 }
  0x1e   :  { %p455_p1 = pnand %p454_p0, %p448_p11 }
  0x20   :  { %458 = shalt.err (!%p455_p1)
}
  0x21   :  { %23 = dma.hbm_to_vmem [thread:$0]  %s620_s0, 128, %s21_s21, [#allocation6]  }
  0x22   :  { %s511_s16 = smov [#allocation9]   ;;  %s512_s18 = smov [#allocation10]  }
  0x23   :  { %s40_s17 = sshll.u32 %s511_s16, 4  ;;  %s50_s19 = sshll.u32 %s512_s18, 4  ;;  %s41_s17 = int_to_ptr.vmem [resolvable:$true] %s40_s17  ;;  %s51_s19 = int_to_ptr.vmem [resolvable:$true] %s50_s19 }
  0x24   :  { %s459_s23 = scalar_lea.hbm %s622_s2, 128 }
  0x25   :  { %p460_p2 = scmp.ne.s32.totalorder %s622_s2, %s459_s23  ;;  %p463_p3 = scmp.lt.u32.totalorder %s459_s23, %s622_s2 }
  0x27   :  { %p465_p4 = pnand %p463_p3, %p460_p2 }
  0x29   :  { %468 = shalt.err (!%p465_p4)
}
  0x2a   :  { %s469_s0 = scalar_lea.vmem %s41_s17, 128  ;;  %p474_p6 = scmp.lt.s32.totalorder %s41_s17, %s41_s17 }
  0x2b   :  { %p470_p5 = scmp.ne.s32.totalorder %s41_s17, %s469_s0  ;;  %p475_p7 = scmp.lt.s32.totalorder %s469_s0, %s469_s0 }
  0x2d   :  { %p476_p8 = por %p475_p7, %p474_p6 }
  0x2f   :  { %p477_p9 = pnand %p476_p8, %p470_p5 }
  0x31   :  { %480 = shalt.err (!%p477_p9)
}
  0x32   :  { %43 = dma.hbm_to_vmem [thread:$0]  %s622_s2, 128, %s41_s17, [#allocation8]  }
  0x33   :  { %s481_s6 = scalar_lea.hbm %s623_s3, 128 }
  0x34   :  { %p482_p10 = scmp.ne.s32.totalorder %s623_s3, %s481_s6  ;;  %p485_p11 = scmp.lt.u32.totalorder %s481_s6, %s623_s3 }
  0x36   :  { %p487_p12 = pnand %p485_p11, %p482_p10 }
  0x38   :  { %490 = shalt.err (!%p487_p12)
}
  0x39   :  { %s491_s11 = scalar_lea.vmem %s51_s19, 128  ;;  %p496_p0 = scmp.lt.s32.totalorder %s51_s19, %s51_s19 }
  0x3a   :  { %p492_p13 = scmp.ne.s32.totalorder %s51_s19, %s491_s11  ;;  %p497_p1 = scmp.lt.s32.totalorder %s491_s11, %s491_s11 }
  0x3c   :  { %p498_p2 = por %p497_p1, %p496_p0 }
  0x3e   :  { %p499_p3 = pnand %p498_p2, %p492_p13 }
  0x40   :  { %502 = shalt.err (!%p499_p3)
}
  0x41   :  { %53 = dma.hbm_to_vmem [thread:$0]  %s623_s3, 128, %s51_s19, [#allocation11]  }
  0x42   :  { %503 = dma.done.wait [#allocation6], 128  }
  0x43   :  { %504 = vsyncadd [#allocation6], 4294967168 }
  0x44   :  { %505 = dma.done.wait [#allocation8], 256  }
  0x45   :  { %506 = vsyncadd [#allocation8], 4294967040 }
  0x46   :  { %507 = dma.done.wait [#allocation11], 128  }
  0x47   :  { %508 = vsyncadd [#allocation11], 4294967168  ;;  %v70_v0 = vld [vmem:[#allocation5] sm:$0xff]  ;;  %vm73_vm0 = vcmask 261120   ;;  %v71_v1 = vld [vmem:[#allocation7] sm:$0xff]  ;;  %v281_v33 = vlaneseq  ;;  %vm321_vm3 = vcmask 64512  }
  0x48   :  { %v100_v2 = vld [vmem:[#allocation9] sm:$0xff]  ;;  %v72_v3 = vmul.f32 %v70_v0, %v70_v0  ;;  %v80_v4 = vmul.f32 %v71_v1, %v71_v1  ;;  %v101_v6 = vld [vmem:[#allocation10] sm:$0xff]  ;;  %vm92_vm4 = vcmask 7168   ;;  %v513_v57 = vmov 0.0  }
  0x49   :  { %v102_v5 = vmul.f32 %v100_v2, %v100_v2  ;;  %v110_v7 = vmul.f32 %v101_v6, %v101_v6  ;;  %v282_v34 = vshrl.u32 %v281_v33, 7  ;;  %v285_v36 = vand.u32 127, %v281_v33  ;;  %99 = vst.msk [vmem:[#allocation4 + $0x8] sm:$0xff] %vm92_vm4, %v513_v57  ;;  %98 = vst.msk [vmem:[#allocation4] sm:$0xff] %vm92_vm4, %v513_v57 }
  0x4a   :  { %v74_v8 = vsel %vm73_vm0, %v72_v3, 0.0  ;;  %v81_v10 = vsel %vm73_vm0, %v80_v4, 0.0 }
  0x4b   :  { %v104_v9 = vsel %vm73_vm0, %v102_v5, 0.0  ;;  %75 = vadd.xlane.f32.xlu0 %v74_v8  ;;  %v111_v11 = vsel %vm73_vm0, %v110_v7, 0.0  ;;  %v283_v35 = vadd.s32 8, %v282_v34  ;;  %vm295_vm2 = vcmp.eq.s32.totalorder %v282_v34, %v285_v36 }
  0x4c   :  { %105 = vadd.xlane.f32.xlu1 %v104_v9 }
  0x4d   :  { %v373_v37 = vadd.s32 4294967288, %v283_v35 }
  0x4f   :  { %82 = vadd.xlane.f32.xlu0 %v81_v10  ;;  %vm304_vm1 = vcmp.eq.s32.totalorder %v373_v37, %v285_v36 }
  0x50   :  { %112 = vadd.xlane.f32.xlu1 %v111_v11  ;;  %v320_v60 = vld [vmem:[#allocation4 + $0x8] sm:$0xff]  ;;  %v319_v63 = vld [vmem:[#allocation4] sm:$0xff] }
  0xd8   :  { %v76_v12 = vpop.xlane.xlu0 %75 }
  0xd9   :  { %v106_v13 = vpop.xlane.xlu1 %105  ;;  %v77_v14 = vmax.f32 %v76_v12, 1e-24 }
  0xda   :  { %v107_v15 = vmax.f32 %v106_v13, 1e-24 }
  0xdb   :  { %395 = vrsqrt.f32 %v77_v14 }
  0xdc   :  { %v83_v16 = vpop.xlane.xlu0 %82  ;;  %397 = vrsqrt.f32 %v107_v15 }
  0xdd   :  { %v113_v17 = vpop.xlane.xlu1 %112  ;;  %v84_v18 = vmax.f32 %v83_v16, 1e-24 }
  0xde   :  { %v114_v19 = vmax.f32 %v113_v17, 1e-24 }
  0xdf   :  { %399 = vrsqrt.f32 %v84_v18 }
  0xe0   :  { %401 = vrsqrt.f32 %v114_v19 }
  0xe5   :  { %v396_v20 = vpop.eup %395 }
  0xe6   :  { %v398_v21 = vpop.eup %397  ;;  %v79_v22 = vmul.f32 %v396_v20, %v70_v0 }
  0xe7   :  { %v109_v23 = vmul.f32 %v398_v21, %v100_v2 }
  0xe8   :  { %v94_v24 = vmul.f32 2.0, %v79_v22 }
  0xe9   :  { %v400_v25 = vpop.eup %399  ;;  %380 = vmatprep.subr.msk.mxu0 %vm73_vm0, %v109_v23 }
  0xea   :  { %v402_v26 = vpop.eup %401  ;;  %96 = vst.msk [vmem:[#allocation2] sm:$0xff] %vm73_vm0, %v94_v24  ;;  %v86_v27 = vmul.f32 %v400_v25, %v71_v1  ;;  %381 = vmatpush3.xpose.msk.msra.mxu0 %vm73_vm0, %v109_v23 }
  0xeb   :  { %v116_v28 = vmul.f32 %v402_v26, %v101_v6 }
  0xec   :  { %v95_v29 = vmul.f32 2.0, %v86_v27  ;;  %v87_v30 = vmul.f32 %v86_v27, %v79_v22 }
  0xed   :  { %385 = vmatprep.subr.msk.mxu1 %vm73_vm0, %v116_v28 }
  0xee   :  { %97 = vst.msk [vmem:[#allocation2 + $0x8] sm:$0xff] %vm73_vm0, %v95_v29  ;;  %386 = vmatpush3.xpose.msk.msra.mxu1 %vm73_vm0, %v116_v28  ;;  %v88_v56 = vsel %vm73_vm0, %v87_v30, 0.0 }
  0xf1   :  { %v117_v31 = vld [vmem:[#allocation2] sm:$0xff] }
  0xf2   :  { %382 = vmatprep.mubr.msk.f32.mxu0 %vm73_vm0, %v117_v31  ;;  %387 = vmatprep.mubr.msk.f32.mxu1 %vm73_vm0, %v117_v31 }
  0xf5   :  { %v118_v32 = vld [vmem:[#allocation2 + $0x8] sm:$0xff] }
  0xf6   :  { %383 = vmatmul.mubr.msk.f32.vlgmr.msra.gmra.mrb[0].mxu0 %vm73_vm0, %v118_v32  ;;  %388 = vmatmul.mubr.msk.f32.vlgmr.msra.gmra.mrb[0].mxu1 %vm73_vm0, %v118_v32 }
 0x1c9   :  { %v384_v38 = vpop.f32.mrb[0].mxu0  ;;  %v389_v39 = vpop.f32.mrb[0].mxu1 }
 0x1ca   :  { %v311_v40 = vmul.f32 1.442695, %v384_v38  ;;  %v314_v41 = vsel %vm304_vm1, -inf, %v389_v39  ;;  %v194_v42 = vpop.f32.mrb[1].mxu0  ;;  %v272_v43 = vpop.f32.mrb[1].mxu1 }
 0x1cb   :  { %v317_v44 = vmul.f32 1.442695, %v314_v41  ;;  %v307_v45 = vsel %vm295_vm2, -inf, %v194_v42  ;;  %v315_v47 = vmul.f32 1.442695, %v272_v43 }
 0x1cc   :  { %403 = vpow2.f32 %v311_v40  ;;  %v309_v46 = vmul.f32 1.442695, %v307_v45 }
 0x1cd   :  { %405 = vpow2.f32 %v317_v44 }
 0x1ce   :  { %407 = vpow2.f32 %v309_v46 }
 0x1cf   :  { %409 = vpow2.f32 %v315_v47 }
 0x1d6   :  { %v404_v48 = vpop.eup %403 }
 0x1d7   :  { %v406_v49 = vpop.eup %405  ;;  %v325_v50 = vsel %vm321_vm3, %v404_v48, 0.0 }
 0x1d8   :  { %v408_v51 = vpop.eup %407  ;;  %326 = vadd.xlane.f32.xlu1 %v325_v50  ;;  %v331_v54 = vsel %vm321_vm3, %v406_v49, 0.0 }
 0x1d9   :  { %v322_v52 = vsel %vm321_vm3, %v408_v51, 0.0  ;;  %v410_v53 = vpop.eup %409 }
 0x1da   :  { %323 = vadd.xlane.f32.xlu0 %v322_v52  ;;  %v328_v55 = vsel %vm321_vm3, %v410_v53, 0.0 }
 0x1dc   :  { %332 = vadd.xlane.f32.xlu1 %v331_v54 }
 0x1de   :  { %329 = vadd.xlane.f32.xlu0 %v328_v55 }
 0x1e2   :  { %89 = vadd.xlane.f32.xlu0 %v88_v56 }
 0x265   :  { %v327_v58 = vpop.xlane.xlu1 %326 }
 0x267   :  { %v324_v59 = vpop.xlane.xlu0 %323 }
 0x269   :  { %v333_v61 = vpop.xlane.xlu1 %332 }
 0x26a   :  { %v335_v62 = vadd.f32 %v333_v61, %v327_v58 }
 0x26b   :  { %v330_v0 = vpop.xlane.xlu0 %329 }
 0x26c   :  { %v337_v1 = vadd.f32 %v335_v62, %v320_v60  ;;  %v334_v2 = vadd.f32 %v330_v0, %v324_v59 }
 0x26e   :  { %340 = vst.msk [vmem:[#allocation4 + $0x8] sm:$0xff] %vm92_vm4, %v337_v1  ;;  %v336_v3 = vadd.f32 %v334_v2, %v319_v63 }
 0x26f   :  { %v90_v4 = vpop.xlane.xlu0 %89 }
 0x270   :  { %339 = vst.msk [vmem:[#allocation4] sm:$0xff] %vm92_vm4, %v336_v3  ;;  %v91_v5 = vmul.f32 2.0, %v90_v4 }
 0x272   :  { %93 = vst.msk [vmem:[#allocation3] sm:$0xff] %vm92_vm4, %v91_v5 }
 0x275   :  { %v345_v6 = vld [vmem:[#allocation4 + $0x8] sm:$0xff] }
 0x276   :  { %411 = vlog2.f32 %v345_v6 }
 0x277   :  { %v344_v7 = vld [vmem:[#allocation4] sm:$0xff] }
 0x278   :  { %413 = vlog2.f32 %v344_v7 }
 0x279   :  { %v350_v11 = vld [vmem:[#allocation3] sm:$0xff] }
 0x280   :  { %v412_v8 = vpop.eup %411 }
 0x281   :  { %v349_v9 = vmul.f32 0.6931472, %v412_v8 }
 0x282   :  { %v414_v10 = vpop.eup %413 }
 0x283   :  { %v347_v12 = vmul.f32 0.6931472, %v414_v10  ;;  %v353_v13 = vsub.f32 %v349_v9, %v350_v11 }
 0x285   :  { %v351_v14 = vsub.f32 %v347_v12, %v350_v11  ;;  %354 = vst.msk [vmem:[%s625_s5] sm:$0xff] %vm92_vm4, %v353_v13 }
 0x287   :  { %352 = vst.msk [vmem:[%s624_s4] sm:$0xff] %vm92_vm4, %v351_v14 }
 0x288   :  { %363 = vsyncpa [#allocation6], 1 }
 0x289   :  { %364 = vsyncpa [#allocation8], 1 }
 0x28a   :  { %365 = vsyncpa [#allocation11], 1 }

</bundles_post_ra>
